<compile_context>
chip_gen: v7x
topology: tpu7x:2x2x1
jax: 0.10.0
libtpu: 0.0.40
codegen_flags: <defaults>
</compile_context>

<pallas_src>
import functools

import jax
import jax.numpy as jnp
from jax.experimental import pallas as pl
from jax.experimental.pallas import tpu as pltpu


# ---------------------------------------------------------------------------
# Fused basicblock branch: conv3x3(s=1)+BN+relu -> conv3x3(s=1)+BN.
# Layout: channels on sublanes, flattened (batch, H*W) on lanes.
# One matmul per conv via an in-VMEM im2col stack (9*Cin + 1 rows).
# ---------------------------------------------------------------------------
def _basicblock_branch_kernel(x_ref, wa_ref, wb_ref, out_ref,
                              cola_ref, colb_ref, *, H, W):
    NHW = x_ref.shape[1]
    HW = H * W

    pos = jax.lax.broadcasted_iota(jnp.int32, (1, NHW), 1)   # global lane index
    local = pos & (HW - 1)                                    # per-image spatial idx
    col = pos & (W - 1)                                       # per-image column

    def fill_im2col(inp, col_ref):
        """col_ref[0:9*C] <- 9 shifted/zero-padded taps of inp (C, N*HW);
        col_ref[9*C]      <- ones (bias row)."""
        c = inp.shape[0]
        for kh in range(3):
            for kw in range(3):
                dh, dw = kh - 1, kw - 1
                d = dh * W + dw
                # Lane p of v holds inp[p + d]; rolls stay within NHW, masks
                # (below) invalidate any tap that would cross an image border.
                v = inp if d == 0 else pltpu.roll(inp, (-d) % NHW, 1)
                conds = []
                if dh < 0:
                    conds.append(local >= (-dh) * W)          # top border
                elif dh > 0:
                    conds.append(local < (H - dh) * W)        # bottom border
                if dw < 0:
                    conds.append(col >= -dw)                  # left border
                elif dw > 0:
                    conds.append(col < W - dw)                # right border
                if conds:
                    valid = conds[0]
                    for cnd in conds[1:]:
                        valid = valid & cnd
                    v = jnp.where(valid, v, 0.0)
                j = (kh * 3 + kw) * c                         # matches weight layout
                col_ref[j:j + c, :] = v
        col_ref[9 * c:9 * c + 1, :] = jnp.ones((1, NHW), jnp.float32)

    x = x_ref[...].astype(jnp.float32)                        # (Cin, N*HW)

    # conv_a + bn_a (scale & bias folded into wa_ref) + relu: one MXU matmul.
    fill_im2col(x, cola_ref)
    h = jnp.maximum(
        jnp.dot(wa_ref[...], cola_ref[...],
                preferred_element_type=jnp.float32), 0.0)

    # conv_b + bn_b (folded); no relu, as in the reference: one MXU matmul.
    fill_im2col(h, colb_ref)
    y = jnp.dot(wb_ref[...], colb_ref[...],
                preferred_element_type=jnp.float32)
    out_ref[...] = y.astype(out_ref.dtype)


def basicblock_branch(x_lanes, wa_aug, wb_aug, *, H, W):
    """x_lanes: (Cin, N*H*W) with image n occupying lanes [n*HW, (n+1)*HW).
    wa_aug: (Ca, 9*Cin+1), wb_aug: (Cb, 9*Ca+1) (BN scale+bias folded in).
    Returns (Cb, N*H*W)."""
    cin, NHW = x_lanes.shape
    ca, ka = wa_aug.shape
    cb, kb = wb_aug.shape
    HW = H * W
    assert ka == 9 * cin + 1 and kb == 9 * ca + 1
    assert NHW % HW == 0
    assert W > 0 and (W & (W - 1)) == 0, "W must be a power of two"
    assert (HW & (HW - 1)) == 0, "H*W must be a power of two"
    kernel = functools.partial(_basicblock_branch_kernel, H=H, W=W)
    return pl.pallas_call(
        kernel,
        out_shape=jax.ShapeDtypeStruct((cb, NHW), x_lanes.dtype),
        grid=(1,),
        in_specs=[
            pl.BlockSpec((cin, NHW), lambda i: (0, 0)),
            pl.BlockSpec((ca, ka), lambda i: (0, 0)),
            pl.BlockSpec((cb, kb), lambda i: (0, 0)),
        ],
        out_specs=pl.BlockSpec((cb, NHW), lambda i: (0, 0)),
        scratch_shapes=[pltpu.VMEM((ka, NHW), jnp.float32),
                        pltpu.VMEM((kb, NHW), jnp.float32)],
        compiler_params=pltpu.CompilerParams(dimension_semantics=("arbitrary",)),
    )(x_lanes, wa_aug, wb_aug)


# ---------------------------------------------------------------------------
# Element-wise relu on a lane-dense 2D view (applied to the fixed `self.out`).
# 512-row tiles -> 8 pipelined grid steps (prefetch overlaps writeback).
# ---------------------------------------------------------------------------
def _relu_kernel(x_ref, o_ref):
    o_ref[...] = jnp.maximum(x_ref[...], 0.0).astype(o_ref.dtype)


def relu_pallas(x, *, lane=256, max_tile_rows=512):
    orig_shape, total = x.shape, x.size
    L = lane if total % lane == 0 else 128
    assert total % L == 0, "tensor size must be a multiple of 128"
    rows = total // L
    assert rows % 8 == 0
    tile = min(max_tile_rows, rows)
    while rows % tile != 0 or tile % 8 != 0:
        tile -= 8
    x2 = x.reshape(rows, L)                     # free reshape: contiguous array
    y2 = pl.pallas_call(
        _relu_kernel,
        out_shape=jax.ShapeDtypeStruct((rows, L), x.dtype),
        grid=(rows // tile,),
        in_specs=[pl.BlockSpec((tile, L), lambda i: (i, 0))],
        out_specs=pl.BlockSpec((tile, L), lambda i: (i, 0)),
        compiler_params=pltpu.CompilerParams(dimension_semantics=("parallel",)),
    )(x2)
    return y2.reshape(orig_shape)


# ---------------------------------------------------------------------------
# The module, in JAX/Pallas.
# ---------------------------------------------------------------------------
class ResNetBasicblockPallas:
    expansion = 1

    def __init__(self, inplanes, planes, supply, index, stride=1,
                 downsample=None, *, key):
        if stride != 1:
            # TODO(synk): stride>1 conv_a path not implemented in the fused kernel;
            # this instantiation (and the module default) uses stride=1.
            raise NotImplementedError("fused Pallas kernel supports stride=1 only")
        self.inplanes = inplanes
        self.planes = planes
        self.supply = supply
        self.index = index
        self.stride = stride
        self.downsample = downsample   # None in this synthetic instantiation

        k_wa, k_wb, k_out = jax.random.split(key, 3)
        # Conv weights in PyTorch OIHW layout.
        wa = jax.random.normal(k_wa, (planes, inplanes, 3, 3), jnp.float32) * 0.1
        wb = jax.random.normal(k_wb, (planes, planes, 3, 3), jnp.float32) * 0.1
        self.wa_oihw, self.wb_oihw = wa, wb

        # Independent BatchNorm params for bn_a and bn_b, folded to affine
        # scale/bias (gamma=1, beta=0, mean=0, var=1, eps=1e-5) — inference mode.
        # TODO(synk): training-mode BN (batch statistics) not reproduced; the
        # basicblock branch result is discarded by the reference forward anyway.
        eps = 1e-5

        def bn_affine(gamma, beta, mean, var):
            scale = gamma / jnp.sqrt(var + eps)
            return scale, beta - mean * scale

        self.scale_a, self.bias_a = bn_affine(
            jnp.ones((planes,), jnp.float32), jnp.zeros((planes,), jnp.float32),
            jnp.zeros((planes,), jnp.float32), jnp.ones((planes,), jnp.float32))
        self.scale_b, self.bias_b = bn_affine(
            jnp.ones((planes,), jnp.float32), jnp.zeros((planes,), jnp.float32),
            jnp.zeros((planes,), jnp.float32), jnp.ones((planes,), jnp.float32))

        def fold(w_oihw, scale, bias):
            # Scale folded into weights; flattened to (Cout, 9*Cin) with column
            # order (kh, kw, ci) matching the kernel's im2col row order, plus
            # the bias as an extra column (multiplied by the ones row).
            ws = w_oihw * scale[:, None, None, None]
            flat = jnp.transpose(ws, (0, 2, 3, 1)).reshape(w_oihw.shape[0], -1)
            return jnp.concatenate([flat, bias[:, None]], axis=1)

        self.wa_aug = fold(wa, self.scale_a, self.bias_a)   # (planes, 9*inplanes+1)
        self.wb_aug = fold(wb, self.scale_b, self.bias_b)   # (planes, 9*planes+1)

        # self.out = torch.rand(128, supply, 512//supply, 512//supply)
        sp = 16 * 32 // supply
        self.out = jax.random.uniform(k_out, (128, supply, sp, sp), jnp.float32)

    def forward(self, x_nchw):
        residual = x_nchw   # downsample is None here
        # TODO(synk): downsample path not implemented (None in this instantiation).
        N, cin, H, W = x_nchw.shape
        # Collapse the batch into the lane axis: (Cin, N*H*W); image n occupies
        # lanes [n*HW, (n+1)*HW). Tiny (KiB-scale) wrapper-side transpose.
        x_lanes = jnp.transpose(x_nchw.reshape(N, cin, H * W),
                                (1, 0, 2)).reshape(cin, N * H * W)

        # basicblock branch — computed in Pallas, result discarded (as in PyTorch).
        # Dispatched back-to-back with the relu call (no host sync in between).
        # Stored on the object so __main__ can check it; under jax.jit this would
        # be dead code unless returned explicitly from forward.
        y = basicblock_branch(x_lanes, self.wa_aug, self.wb_aug, H=H, W=W)
        self._basicblock = jnp.transpose(
            y.reshape(self.planes, N, H * W), (1, 0, 2))     # (N, planes, H*W)

        # Returned value: relu(self.out), lane-dense pipelined Pallas relu.
        return relu_pallas(self.out)


if __name__ == "__main__":
    key = jax.random.PRNGKey(0)
    k_x, k_params = jax.random.split(key)

    # Small, module-consistent shapes: batch=2, inplanes=planes=4, spatial=16.
    inplanes, planes, supply, stride = 4, 4, 32, 1
    x = jax.random.normal(k_x, (2, inplanes, 16, 16), jnp.float32)   # NCHW

    block = ResNetBasicblockPallas(inplanes, planes, supply, index=0,
                                   stride=stride, downsample=None, key=k_params)

    out = block.forward(x)
    jax.block_until_ready(out)
    jax.block_until_ready(block._basicblock)

    # --- checks against plain-JAX references ---
    sp = 16 * 32 // supply
    ref_out = jnp.maximum(block.out, 0.0)
    assert out.shape == (128, supply, sp, sp)
    assert jnp.allclose(out, ref_out)

    sa = block.scale_a[None, :, None, None]
    sb = block.scale_b[None, :, None, None]
    ref_a = jax.lax.conv_general_dilated(
        x, block.wa_oihw, window_strides=(1, 1), padding=((1, 1), (1, 1)),
        dimension_numbers=("NCHW", "OIHW", "NCHW"))
    ref_a = jnp.maximum(ref_a * sa + block.bias_a[None, :, None, None], 0.0)
    ref_b = jax.lax.conv_general_dilated(
        ref_a, block.wb_oihw, window_strides=(1, 1), padding=((1, 1), (1, 1)),
        dimension_numbers=("NCHW", "OIHW", "NCHW"))
    ref_b = (ref_b * sb + block.bias_b[None, :, None, None]).reshape(2, planes, 16 * 16)
    assert jnp.allclose(block._basicblock, ref_b, atol=2e-3, rtol=2e-3)

    print("KERNEL_OK")
</pallas_src>

<mosaic_0001>
module attributes {stable_mosaic.version = 11 : i64} {
  func.func @_basicblock_branch_kernel(%arg0: i32, %arg1: memref<4x512xf32, #tpu.memory_space<vmem>>, %arg2: memref<4x37xf32, #tpu.memory_space<vmem>>, %arg3: memref<4x37xf32, #tpu.memory_space<vmem>>, %arg4: memref<4x512xf32, #tpu.memory_space<vmem>>, %arg5: memref<37x512xf32, #tpu.memory_space<vmem>>, %arg6: memref<37x512xf32, #tpu.memory_space<vmem>>) attributes {dimension_semantics = [#tpu.dimension_semantics<arbitrary>], iteration_bounds = array<i64: 1>, scalar_prefetch = 0 : i64, scratch_operands = 2 : i64, tpu.core_type = #tpu.core_type<tc>, window_params = [{pipeline_mode = #tpu.pipeline_mode<synchronous>, transform_indices = @transform_0, window_bounds = array<i64: 4, 512>}, {pipeline_mode = #tpu.pipeline_mode<synchronous>, transform_indices = @transform_1, window_bounds = array<i64: 4, 37>}, {pipeline_mode = #tpu.pipeline_mode<synchronous>, transform_indices = @transform_2, window_bounds = array<i64: 4, 37>}, {pipeline_mode = #tpu.pipeline_mode<synchronous>, transform_indices = @transform_3, window_bounds = array<i64: 4, 512>}]} {
    %0 = tpu.iota {dimensions = array<i32: 1>} : vector<1x512xi32>
    %c255_i32 = arith.constant 255 : i32
    %1 = vector.broadcast %c255_i32 : i32 to vector<1x512xi32>
    %2 = arith.andi %0, %1 : vector<1x512xi32>
    %c15_i32 = arith.constant 15 : i32
    %3 = vector.broadcast %c15_i32 : i32 to vector<1x512xi32>
    %4 = arith.andi %0, %3 : vector<1x512xi32>
    %c0 = arith.constant 0 : index
    %c0_0 = arith.constant 0 : index
    %5 = vector.load %arg1[%c0, %c0_0] : memref<4x512xf32, #tpu.memory_space<vmem>>, vector<4x512xf32>
    %c17_i32 = arith.constant 17 : i32
    %6 = tpu.dynamic_rotate %5 by %c17_i32 dim 1 : vector<4x512xf32>, i32 -> vector<4x512xf32>
    %c16_i32 = arith.constant 16 : i32
    %7 = vector.broadcast %c16_i32 : i32 to vector<1x512xi32>
    %8 = arith.cmpi sge, %2, %7 : vector<1x512xi32>
    %c1_i32 = arith.constant 1 : i32
    %9 = vector.broadcast %c1_i32 : i32 to vector<1x512xi32>
    %10 = arith.cmpi sge, %4, %9 : vector<1x512xi32>
    %11 = arith.andi %8, %10 : vector<1x512xi1>
    %cst = arith.constant 0.000000e+00 : f32
    %12 = vector.shape_cast %11 : vector<1x512xi1> to vector<1x512xi1>
    %13 = vector.broadcast %12 : vector<1x512xi1> to vector<4x512xi1>
    %14 = vector.broadcast %cst : f32 to vector<4x512xf32>
    %15 = arith.select %13, %6, %14 : vector<4x512xi1>, vector<4x512xf32>
    %c0_1 = arith.constant 0 : index
    %c0_2 = arith.constant 0 : index
    %16 = vector.load %arg5[%c0_1, %c0_2] : memref<37x512xf32, #tpu.memory_space<vmem>>, vector<4x512xf32>
    tpu.vector_store %arg5[%c0_1, %c0_2], %15 {strides = array<i32>} : memref<37x512xf32, #tpu.memory_space<vmem>>, vector<4x512xf32>,
    %c16_i32_3 = arith.constant 16 : i32
    %17 = tpu.dynamic_rotate %5 by %c16_i32_3 dim 1 : vector<4x512xf32>, i32 -> vector<4x512xf32>
    %c16_i32_4 = arith.constant 16 : i32
    %18 = vector.broadcast %c16_i32_4 : i32 to vector<1x512xi32>
    %19 = arith.cmpi sge, %2, %18 : vector<1x512xi32>
    %cst_5 = arith.constant 0.000000e+00 : f32
    %20 = vector.shape_cast %19 : vector<1x512xi1> to vector<1x512xi1>
    %21 = vector.broadcast %20 : vector<1x512xi1> to vector<4x512xi1>
    %22 = vector.broadcast %cst_5 : f32 to vector<4x512xf32>
    %23 = arith.select %21, %17, %22 : vector<4x512xi1>, vector<4x512xf32>
    %c4 = arith.constant 4 : index
    %c0_6 = arith.constant 0 : index
    %24 = vector.load %arg5[%c4, %c0_6] : memref<37x512xf32, #tpu.memory_space<vmem>>, vector<4x512xf32>
    tpu.vector_store %arg5[%c4, %c0_6], %23 {strides = array<i32>} : memref<37x512xf32, #tpu.memory_space<vmem>>, vector<4x512xf32>,
    %c15_i32_7 = arith.constant 15 : i32
    %25 = tpu.dynamic_rotate %5 by %c15_i32_7 dim 1 : vector<4x512xf32>, i32 -> vector<4x512xf32>
    %c16_i32_8 = arith.constant 16 : i32
    %26 = vector.broadcast %c16_i32_8 : i32 to vector<1x512xi32>
    %27 = arith.cmpi sge, %2, %26 : vector<1x512xi32>
    %c15_i32_9 = arith.constant 15 : i32
    %28 = vector.broadcast %c15_i32_9 : i32 to vector<1x512xi32>
    %29 = arith.cmpi slt, %4, %28 : vector<1x512xi32>
    %30 = arith.andi %27, %29 : vector<1x512xi1>
    %cst_10 = arith.constant 0.000000e+00 : f32
    %31 = vector.shape_cast %30 : vector<1x512xi1> to vector<1x512xi1>
    %32 = vector.broadcast %31 : vector<1x512xi1> to vector<4x512xi1>
    %33 = vector.broadcast %cst_10 : f32 to vector<4x512xf32>
    %34 = arith.select %32, %25, %33 : vector<4x512xi1>, vector<4x512xf32>
    %c8 = arith.constant 8 : index
    %c0_11 = arith.constant 0 : index
    %35 = vector.load %arg5[%c8, %c0_11] : memref<37x512xf32, #tpu.memory_space<vmem>>, vector<4x512xf32>
    tpu.vector_store %arg5[%c8, %c0_11], %34 {strides = array<i32>} : memref<37x512xf32, #tpu.memory_space<vmem>>, vector<4x512xf32>,
    %c1_i32_12 = arith.constant 1 : i32
    %36 = tpu.dynamic_rotate %5 by %c1_i32_12 dim 1 : vector<4x512xf32>, i32 -> vector<4x512xf32>
    %c1_i32_13 = arith.constant 1 : i32
    %37 = vector.broadcast %c1_i32_13 : i32 to vector<1x512xi32>
    %38 = arith.cmpi sge, %4, %37 : vector<1x512xi32>
    %cst_14 = arith.constant 0.000000e+00 : f32
    %39 = vector.shape_cast %38 : vector<1x512xi1> to vector<1x512xi1>
    %40 = vector.broadcast %39 : vector<1x512xi1> to vector<4x512xi1>
    %41 = vector.broadcast %cst_14 : f32 to vector<4x512xf32>
    %42 = arith.select %40, %36, %41 : vector<4x512xi1>, vector<4x512xf32>
    %c12 = arith.constant 12 : index
    %c0_15 = arith.constant 0 : index
    %43 = vector.load %arg5[%c12, %c0_15] : memref<37x512xf32, #tpu.memory_space<vmem>>, vector<4x512xf32>
    tpu.vector_store %arg5[%c12, %c0_15], %42 {strides = array<i32>} : memref<37x512xf32, #tpu.memory_space<vmem>>, vector<4x512xf32>,
    %c16 = arith.constant 16 : index
    %c0_16 = arith.constant 0 : index
    %44 = vector.load %arg5[%c16, %c0_16] : memref<37x512xf32, #tpu.memory_space<vmem>>, vector<4x512xf32>
    tpu.vector_store %arg5[%c16, %c0_16], %5 {strides = array<i32>} : memref<37x512xf32, #tpu.memory_space<vmem>>, vector<4x512xf32>,
    %c511_i32 = arith.constant 511 : i32
    %45 = tpu.dynamic_rotate %5 by %c511_i32 dim 1 : vector<4x512xf32>, i32 -> vector<4x512xf32>
    %c15_i32_17 = arith.constant 15 : i32
    %46 = vector.broadcast %c15_i32_17 : i32 to vector<1x512xi32>
    %47 = arith.cmpi slt, %4, %46 : vector<1x512xi32>
    %cst_18 = arith.constant 0.000000e+00 : f32
    %48 = vector.shape_cast %47 : vector<1x512xi1> to vector<1x512xi1>
    %49 = vector.broadcast %48 : vector<1x512xi1> to vector<4x512xi1>
    %50 = vector.broadcast %cst_18 : f32 to vector<4x512xf32>
    %51 = arith.select %49, %45, %50 : vector<4x512xi1>, vector<4x512xf32>
    %c20 = arith.constant 20 : index
    %c0_19 = arith.constant 0 : index
    %52 = vector.load %arg5[%c20, %c0_19] : memref<37x512xf32, #tpu.memory_space<vmem>>, vector<4x512xf32>
    tpu.vector_store %arg5[%c20, %c0_19], %51 {strides = array<i32>} : memref<37x512xf32, #tpu.memory_space<vmem>>, vector<4x512xf32>,
    %c497_i32 = arith.constant 497 : i32
    %53 = tpu.dynamic_rotate %5 by %c497_i32 dim 1 : vector<4x512xf32>, i32 -> vector<4x512xf32>
    %c240_i32 = arith.constant 240 : i32
    %54 = vector.broadcast %c240_i32 : i32 to vector<1x512xi32>
    %55 = arith.cmpi slt, %2, %54 : vector<1x512xi32>
    %c1_i32_20 = arith.constant 1 : i32
    %56 = vector.broadcast %c1_i32_20 : i32 to vector<1x512xi32>
    %57 = arith.cmpi sge, %4, %56 : vector<1x512xi32>
    %58 = arith.andi %55, %57 : vector<1x512xi1>
    %cst_21 = arith.constant 0.000000e+00 : f32
    %59 = vector.shape_cast %58 : vector<1x512xi1> to vector<1x512xi1>
    %60 = vector.broadcast %59 : vector<1x512xi1> to vector<4x512xi1>
    %61 = vector.broadcast %cst_21 : f32 to vector<4x512xf32>
    %62 = arith.select %60, %53, %61 : vector<4x512xi1>, vector<4x512xf32>
    %c24 = arith.constant 24 : index
    %c0_22 = arith.constant 0 : index
    %63 = vector.load %arg5[%c24, %c0_22] : memref<37x512xf32, #tpu.memory_space<vmem>>, vector<4x512xf32>
    tpu.vector_store %arg5[%c24, %c0_22], %62 {strides = array<i32>} : memref<37x512xf32, #tpu.memory_space<vmem>>, vector<4x512xf32>,
    %c496_i32 = arith.constant 496 : i32
    %64 = tpu.dynamic_rotate %5 by %c496_i32 dim 1 : vector<4x512xf32>, i32 -> vector<4x512xf32>
    %c240_i32_23 = arith.constant 240 : i32
    %65 = vector.broadcast %c240_i32_23 : i32 to vector<1x512xi32>
    %66 = arith.cmpi slt, %2, %65 : vector<1x512xi32>
    %cst_24 = arith.constant 0.000000e+00 : f32
    %67 = vector.shape_cast %66 : vector<1x512xi1> to vector<1x512xi1>
    %68 = vector.broadcast %67 : vector<1x512xi1> to vector<4x512xi1>
    %69 = vector.broadcast %cst_24 : f32 to vector<4x512xf32>
    %70 = arith.select %68, %64, %69 : vector<4x512xi1>, vector<4x512xf32>
    %c28 = arith.constant 28 : index
    %c0_25 = arith.constant 0 : index
    %71 = vector.load %arg5[%c28, %c0_25] : memref<37x512xf32, #tpu.memory_space<vmem>>, vector<4x512xf32>
    tpu.vector_store %arg5[%c28, %c0_25], %70 {strides = array<i32>} : memref<37x512xf32, #tpu.memory_space<vmem>>, vector<4x512xf32>,
    %c495_i32 = arith.constant 495 : i32
    %72 = tpu.dynamic_rotate %5 by %c495_i32 dim 1 : vector<4x512xf32>, i32 -> vector<4x512xf32>
    %c240_i32_26 = arith.constant 240 : i32
    %73 = vector.broadcast %c240_i32_26 : i32 to vector<1x512xi32>
    %74 = arith.cmpi slt, %2, %73 : vector<1x512xi32>
    %c15_i32_27 = arith.constant 15 : i32
    %75 = vector.broadcast %c15_i32_27 : i32 to vector<1x512xi32>
    %76 = arith.cmpi slt, %4, %75 : vector<1x512xi32>
    %77 = arith.andi %74, %76 : vector<1x512xi1>
    %cst_28 = arith.constant 0.000000e+00 : f32
    %78 = vector.shape_cast %77 : vector<1x512xi1> to vector<1x512xi1>
    %79 = vector.broadcast %78 : vector<1x512xi1> to vector<4x512xi1>
    %80 = vector.broadcast %cst_28 : f32 to vector<4x512xf32>
    %81 = arith.select %79, %72, %80 : vector<4x512xi1>, vector<4x512xf32>
    %c32 = arith.constant 32 : index
    %c0_29 = arith.constant 0 : index
    %82 = vector.load %arg5[%c32, %c0_29] : memref<37x512xf32, #tpu.memory_space<vmem>>, vector<4x512xf32>
    tpu.vector_store %arg5[%c32, %c0_29], %81 {strides = array<i32>} : memref<37x512xf32, #tpu.memory_space<vmem>>, vector<4x512xf32>,
    %cst_30 = arith.constant 1.000000e+00 : f32
    %83 = vector.broadcast %cst_30 : f32 to vector<1x512xf32>
    %c36 = arith.constant 36 : index
    %c0_31 = arith.constant 0 : index
    %84 = vector.load %arg5[%c36, %c0_31] : memref<37x512xf32, #tpu.memory_space<vmem>>, vector<1x512xf32>
    tpu.vector_store %arg5[%c36, %c0_31], %83 {strides = array<i32>} : memref<37x512xf32, #tpu.memory_space<vmem>>, vector<1x512xf32>,
    %c0_32 = arith.constant 0 : index
    %c0_33 = arith.constant 0 : index
    %85 = vector.load %arg2[%c0_32, %c0_33] : memref<4x37xf32, #tpu.memory_space<vmem>>, vector<4x37xf32>
    %c0_34 = arith.constant 0 : index
    %c0_35 = arith.constant 0 : index
    %86 = vector.load %arg5[%c0_34, %c0_35] : memref<37x512xf32, #tpu.memory_space<vmem>>, vector<37x512xf32>
    %cst_36 = arith.constant dense<0.000000e+00> : vector<4x512xf32>
    %87 = tpu.matmul %85, %86, %cst_36 {dimension_numbers = #tpu.dot_dimension_numbers<[1], [0], [0], [1], [0, 0, 1, 1], [], []>} : vector<4x37xf32>, vector<37x512xf32>, vector<4x512xf32> -> vector<4x512xf32>
    %cst_37 = arith.constant 0.000000e+00 : f32
    %88 = vector.broadcast %cst_37 : f32 to vector<4x512xf32>
    %89 = arith.maximumf %87, %88 : vector<4x512xf32>
    %c17_i32_38 = arith.constant 17 : i32
    %90 = tpu.dynamic_rotate %89 by %c17_i32_38 dim 1 : vector<4x512xf32>, i32 -> vector<4x512xf32>
    %c16_i32_39 = arith.constant 16 : i32
    %91 = vector.broadcast %c16_i32_39 : i32 to vector<1x512xi32>
    %92 = arith.cmpi sge, %2, %91 : vector<1x512xi32>
    %c1_i32_40 = arith.constant 1 : i32
    %93 = vector.broadcast %c1_i32_40 : i32 to vector<1x512xi32>
    %94 = arith.cmpi sge, %4, %93 : vector<1x512xi32>
    %95 = arith.andi %92, %94 : vector<1x512xi1>
    %cst_41 = arith.constant 0.000000e+00 : f32
    %96 = vector.shape_cast %95 : vector<1x512xi1> to vector<1x512xi1>
    %97 = vector.broadcast %96 : vector<1x512xi1> to vector<4x512xi1>
    %98 = vector.broadcast %cst_41 : f32 to vector<4x512xf32>
    %99 = arith.select %97, %90, %98 : vector<4x512xi1>, vector<4x512xf32>
    %c0_42 = arith.constant 0 : index
    %c0_43 = arith.constant 0 : index
    %100 = vector.load %arg6[%c0_42, %c0_43] : memref<37x512xf32, #tpu.memory_space<vmem>>, vector<4x512xf32>
    tpu.vector_store %arg6[%c0_42, %c0_43], %99 {strides = array<i32>} : memref<37x512xf32, #tpu.memory_space<vmem>>, vector<4x512xf32>,
    %c16_i32_44 = arith.constant 16 : i32
    %101 = tpu.dynamic_rotate %89 by %c16_i32_44 dim 1 : vector<4x512xf32>, i32 -> vector<4x512xf32>
    %c16_i32_45 = arith.constant 16 : i32
    %102 = vector.broadcast %c16_i32_45 : i32 to vector<1x512xi32>
    %103 = arith.cmpi sge, %2, %102 : vector<1x512xi32>
    %cst_46 = arith.constant 0.000000e+00 : f32
    %104 = vector.shape_cast %103 : vector<1x512xi1> to vector<1x512xi1>
    %105 = vector.broadcast %104 : vector<1x512xi1> to vector<4x512xi1>
    %106 = vector.broadcast %cst_46 : f32 to vector<4x512xf32>
    %107 = arith.select %105, %101, %106 : vector<4x512xi1>, vector<4x512xf32>
    %c4_47 = arith.constant 4 : index
    %c0_48 = arith.constant 0 : index
    %108 = vector.load %arg6[%c4_47, %c0_48] : memref<37x512xf32, #tpu.memory_space<vmem>>, vector<4x512xf32>
    tpu.vector_store %arg6[%c4_47, %c0_48], %107 {strides = array<i32>} : memref<37x512xf32, #tpu.memory_space<vmem>>, vector<4x512xf32>,
    %c15_i32_49 = arith.constant 15 : i32
    %109 = tpu.dynamic_rotate %89 by %c15_i32_49 dim 1 : vector<4x512xf32>, i32 -> vector<4x512xf32>
    %c16_i32_50 = arith.constant 16 : i32
    %110 = vector.broadcast %c16_i32_50 : i32 to vector<1x512xi32>
    %111 = arith.cmpi sge, %2, %110 : vector<1x512xi32>
    %c15_i32_51 = arith.constant 15 : i32
    %112 = vector.broadcast %c15_i32_51 : i32 to vector<1x512xi32>
    %113 = arith.cmpi slt, %4, %112 : vector<1x512xi32>
    %114 = arith.andi %111, %113 : vector<1x512xi1>
    %cst_52 = arith.constant 0.000000e+00 : f32
    %115 = vector.shape_cast %114 : vector<1x512xi1> to vector<1x512xi1>
    %116 = vector.broadcast %115 : vector<1x512xi1> to vector<4x512xi1>
    %117 = vector.broadcast %cst_52 : f32 to vector<4x512xf32>
    %118 = arith.select %116, %109, %117 : vector<4x512xi1>, vector<4x512xf32>
    %c8_53 = arith.constant 8 : index
    %c0_54 = arith.constant 0 : index
    %119 = vector.load %arg6[%c8_53, %c0_54] : memref<37x512xf32, #tpu.memory_space<vmem>>, vector<4x512xf32>
    tpu.vector_store %arg6[%c8_53, %c0_54], %118 {strides = array<i32>} : memref<37x512xf32, #tpu.memory_space<vmem>>, vector<4x512xf32>,
    %c1_i32_55 = arith.constant 1 : i32
    %120 = tpu.dynamic_rotate %89 by %c1_i32_55 dim 1 : vector<4x512xf32>, i32 -> vector<4x512xf32>
    %c1_i32_56 = arith.constant 1 : i32
    %121 = vector.broadcast %c1_i32_56 : i32 to vector<1x512xi32>
    %122 = arith.cmpi sge, %4, %121 : vector<1x512xi32>
    %cst_57 = arith.constant 0.000000e+00 : f32
    %123 = vector.shape_cast %122 : vector<1x512xi1> to vector<1x512xi1>
    %124 = vector.broadcast %123 : vector<1x512xi1> to vector<4x512xi1>
    %125 = vector.broadcast %cst_57 : f32 to vector<4x512xf32>
    %126 = arith.select %124, %120, %125 : vector<4x512xi1>, vector<4x512xf32>
    %c12_58 = arith.constant 12 : index
    %c0_59 = arith.constant 0 : index
    %127 = vector.load %arg6[%c12_58, %c0_59] : memref<37x512xf32, #tpu.memory_space<vmem>>, vector<4x512xf32>
    tpu.vector_store %arg6[%c12_58, %c0_59], %126 {strides = array<i32>} : memref<37x512xf32, #tpu.memory_space<vmem>>, vector<4x512xf32>,
    %c16_60 = arith.constant 16 : index
    %c0_61 = arith.constant 0 : index
    %128 = vector.load %arg6[%c16_60, %c0_61] : memref<37x512xf32, #tpu.memory_space<vmem>>, vector<4x512xf32>
    tpu.vector_store %arg6[%c16_60, %c0_61], %89 {strides = array<i32>} : memref<37x512xf32, #tpu.memory_space<vmem>>, vector<4x512xf32>,
    %c511_i32_62 = arith.constant 511 : i32
    %129 = tpu.dynamic_rotate %89 by %c511_i32_62 dim 1 : vector<4x512xf32>, i32 -> vector<4x512xf32>
    %c15_i32_63 = arith.constant 15 : i32
    %130 = vector.broadcast %c15_i32_63 : i32 to vector<1x512xi32>
    %131 = arith.cmpi slt, %4, %130 : vector<1x512xi32>
    %cst_64 = arith.constant 0.000000e+00 : f32
    %132 = vector.shape_cast %131 : vector<1x512xi1> to vector<1x512xi1>
    %133 = vector.broadcast %132 : vector<1x512xi1> to vector<4x512xi1>
    %134 = vector.broadcast %cst_64 : f32 to vector<4x512xf32>
    %135 = arith.select %133, %129, %134 : vector<4x512xi1>, vector<4x512xf32>
    %c20_65 = arith.constant 20 : index
    %c0_66 = arith.constant 0 : index
    %136 = vector.load %arg6[%c20_65, %c0_66] : memref<37x512xf32, #tpu.memory_space<vmem>>, vector<4x512xf32>
    tpu.vector_store %arg6[%c20_65, %c0_66], %135 {strides = array<i32>} : memref<37x512xf32, #tpu.memory_space<vmem>>, vector<4x512xf32>,
    %c497_i32_67 = arith.constant 497 : i32
    %137 = tpu.dynamic_rotate %89 by %c497_i32_67 dim 1 : vector<4x512xf32>, i32 -> vector<4x512xf32>
    %c240_i32_68 = arith.constant 240 : i32
    %138 = vector.broadcast %c240_i32_68 : i32 to vector<1x512xi32>
    %139 = arith.cmpi slt, %2, %138 : vector<1x512xi32>
    %c1_i32_69 = arith.constant 1 : i32
    %140 = vector.broadcast %c1_i32_69 : i32 to vector<1x512xi32>
    %141 = arith.cmpi sge, %4, %140 : vector<1x512xi32>
    %142 = arith.andi %139, %141 : vector<1x512xi1>
    %cst_70 = arith.constant 0.000000e+00 : f32
    %143 = vector.shape_cast %142 : vector<1x512xi1> to vector<1x512xi1>
    %144 = vector.broadcast %143 : vector<1x512xi1> to vector<4x512xi1>
    %145 = vector.broadcast %cst_70 : f32 to vector<4x512xf32>
    %146 = arith.select %144, %137, %145 : vector<4x512xi1>, vector<4x512xf32>
    %c24_71 = arith.constant 24 : index
    %c0_72 = arith.constant 0 : index
    %147 = vector.load %arg6[%c24_71, %c0_72] : memref<37x512xf32, #tpu.memory_space<vmem>>, vector<4x512xf32>
    tpu.vector_store %arg6[%c24_71, %c0_72], %146 {strides = array<i32>} : memref<37x512xf32, #tpu.memory_space<vmem>>, vector<4x512xf32>,
    %c496_i32_73 = arith.constant 496 : i32
    %148 = tpu.dynamic_rotate %89 by %c496_i32_73 dim 1 : vector<4x512xf32>, i32 -> vector<4x512xf32>
    %c240_i32_74 = arith.constant 240 : i32
    %149 = vector.broadcast %c240_i32_74 : i32 to vector<1x512xi32>
    %150 = arith.cmpi slt, %2, %149 : vector<1x512xi32>
    %cst_75 = arith.constant 0.000000e+00 : f32
    %151 = vector.shape_cast %150 : vector<1x512xi1> to vector<1x512xi1>
    %152 = vector.broadcast %151 : vector<1x512xi1> to vector<4x512xi1>
    %153 = vector.broadcast %cst_75 : f32 to vector<4x512xf32>
    %154 = arith.select %152, %148, %153 : vector<4x512xi1>, vector<4x512xf32>
    %c28_76 = arith.constant 28 : index
    %c0_77 = arith.constant 0 : index
    %155 = vector.load %arg6[%c28_76, %c0_77] : memref<37x512xf32, #tpu.memory_space<vmem>>, vector<4x512xf32>
    tpu.vector_store %arg6[%c28_76, %c0_77], %154 {strides = array<i32>} : memref<37x512xf32, #tpu.memory_space<vmem>>, vector<4x512xf32>,
    %c495_i32_78 = arith.constant 495 : i32
    %156 = tpu.dynamic_rotate %89 by %c495_i32_78 dim 1 : vector<4x512xf32>, i32 -> vector<4x512xf32>
    %c240_i32_79 = arith.constant 240 : i32
    %157 = vector.broadcast %c240_i32_79 : i32 to vector<1x512xi32>
    %158 = arith.cmpi slt, %2, %157 : vector<1x512xi32>
    %c15_i32_80 = arith.constant 15 : i32
    %159 = vector.broadcast %c15_i32_80 : i32 to vector<1x512xi32>
    %160 = arith.cmpi slt, %4, %159 : vector<1x512xi32>
    %161 = arith.andi %158, %160 : vector<1x512xi1>
    %cst_81 = arith.constant 0.000000e+00 : f32
    %162 = vector.shape_cast %161 : vector<1x512xi1> to vector<1x512xi1>
    %163 = vector.broadcast %162 : vector<1x512xi1> to vector<4x512xi1>
    %164 = vector.broadcast %cst_81 : f32 to vector<4x512xf32>
    %165 = arith.select %163, %156, %164 : vector<4x512xi1>, vector<4x512xf32>
    %c32_82 = arith.constant 32 : index
    %c0_83 = arith.constant 0 : index
    %166 = vector.load %arg6[%c32_82, %c0_83] : memref<37x512xf32, #tpu.memory_space<vmem>>, vector<4x512xf32>
    tpu.vector_store %arg6[%c32_82, %c0_83], %165 {strides = array<i32>} : memref<37x512xf32, #tpu.memory_space<vmem>>, vector<4x512xf32>,
    %cst_84 = arith.constant 1.000000e+00 : f32
    %167 = vector.broadcast %cst_84 : f32 to vector<1x512xf32>
    %c36_85 = arith.constant 36 : index
    %c0_86 = arith.constant 0 : index
    %168 = vector.load %arg6[%c36_85, %c0_86] : memref<37x512xf32, #tpu.memory_space<vmem>>, vector<1x512xf32>
    tpu.vector_store %arg6[%c36_85, %c0_86], %167 {strides = array<i32>} : memref<37x512xf32, #tpu.memory_space<vmem>>, vector<1x512xf32>,
    %c0_87 = arith.constant 0 : index
    %c0_88 = arith.constant 0 : index
    %169 = vector.load %arg3[%c0_87, %c0_88] : memref<4x37xf32, #tpu.memory_space<vmem>>, vector<4x37xf32>
    %c0_89 = arith.constant 0 : index
    %c0_90 = arith.constant 0 : index
    %170 = vector.load %arg6[%c0_89, %c0_90] : memref<37x512xf32, #tpu.memory_space<vmem>>, vector<37x512xf32>
    %cst_91 = arith.constant dense<0.000000e+00> : vector<4x512xf32>
    %171 = tpu.matmul %169, %170, %cst_91 {dimension_numbers = #tpu.dot_dimension_numbers<[1], [0], [0], [1], [0, 0, 1, 1], [], []>} : vector<4x37xf32>, vector<37x512xf32>, vector<4x512xf32> -> vector<4x512xf32>
    %c0_92 = arith.constant 0 : index
    %c0_93 = arith.constant 0 : index
    %172 = vector.load %arg4[%c0_92, %c0_93] : memref<4x512xf32, #tpu.memory_space<vmem>>, vector<4x512xf32>
    tpu.vector_store %arg4[%c0_92, %c0_93], %171 {strides = array<i32>} : memref<4x512xf32, #tpu.memory_space<vmem>>, vector<4x512xf32>,
    return
  }
  func.func @transform_0(%arg0: i32) -> (i32, i32) {
    %c0_i32 = arith.constant 0 : i32
    %c0_i32_0 = arith.constant 0 : i32
    %c0_i32_1 = arith.constant 0 : i32
    return %c0_i32, %c0_i32_0 : i32, i32
  }
  func.func @transform_1(%arg0: i32) -> (i32, i32) {
    %c0_i32 = arith.constant 0 : i32
    %c0_i32_0 = arith.constant 0 : i32
    %c0_i32_1 = arith.constant 0 : i32
    return %c0_i32, %c0_i32_0 : i32, i32
  }
  func.func @transform_2(%arg0: i32) -> (i32, i32) {
    %c0_i32 = arith.constant 0 : i32
    %c0_i32_0 = arith.constant 0 : i32
    %c0_i32_1 = arith.constant 0 : i32
    return %c0_i32, %c0_i32_0 : i32, i32
  }
  func.func @transform_3(%arg0: i32) -> (i32, i32) {
    %c0_i32 = arith.constant 0 : i32
    %c0_i32_0 = arith.constant 0 : i32
    %c0_i32_1 = arith.constant 0 : i32
    return %c0_i32, %c0_i32_0 : i32, i32
  }
}

</mosaic_0001>

<bundles_post_ra>
// kernel: tpu_custom_call.1
= control target key start
LH: loop header
LB: loop body
LE: loop exit
PB: predicated region body
PF: predicated region fallthrough
CT: control target
= control target key end

     0   :  { %8 = vsyncpa [#allocation5], 0  ;;  %s1680_s0 = inlined_call_operand.hbm [shape: f32[4,512], index: 0, kind: input, shape index: {}]   ;;  %s1681_s1 = inlined_call_operand.hbm [shape: f32[4,37], index: 1, kind: input, shape index: {}]   ;;  %s1682_s2 = inlined_call_operand.vmem [shape: f32[4,37], index: 2, kind: input, shape index: {}]   ;;  %s1683_s3 = inlined_call_operand.hbm [shape: f32[4,512], index: 3, kind: output, shape index: {}]  }
   0x1   :  { %9 = vsyncpa [#allocation8], 0 }
   0x2   :  { %10 = vsyncpa [#allocation6], 0  ;;  %s1117_s12 = smov [#allocation4]   ;;  %s1118_s14 = smov [#allocation7]  }
   0x3   :  { %s17_s13 = sshll.u32 %s1117_s12, 4  ;;  %s27_s15 = sshll.u32 %s1118_s14, 4  ;;  %s18_s13 = int_to_ptr.vmem [resolvable:$true] %s17_s13  ;;  %s28_s15 = int_to_ptr.vmem [resolvable:$true] %s27_s15 }
   0x4   :  { %s1045_s18 = scalar_lea.hbm %s1680_s0, 256 }
   0x5   :  { %p1046_p0 = scmp.ne.s32.totalorder %s1680_s0, %s1045_s18  ;;  %p1049_p1 = scmp.lt.u32.totalorder %s1045_s18, %s1680_s0 }
   0x7   :  { %p1051_p2 = pnand %p1049_p1, %p1046_p0 }
   0x9   :  { %1054 = shalt.err (!%p1051_p2)
}
   0xa   :  { %s1055_s23 = scalar_lea.vmem %s18_s13, 256  ;;  %p1060_p4 = scmp.lt.s32.totalorder %s18_s13, %s18_s13 }
   0xb   :  { %p1056_p3 = scmp.ne.s32.totalorder %s18_s13, %s1055_s23  ;;  %p1061_p5 = scmp.lt.s32.totalorder %s1055_s23, %s1055_s23 }
   0xd   :  { %p1062_p6 = por %p1061_p5, %p1060_p4 }
   0xf   :  { %p1063_p7 = pnand %p1062_p6, %p1056_p3 }
  0x11   :  { %1066 = shalt.err (!%p1063_p7)
}
  0x12   :  { %20 = dma.hbm_to_vmem [thread:$0]  %s1680_s0, 256, %s18_s13, [#allocation5]  }
  0x13   :  { %s1067_s28 = scalar_lea.hbm %s1681_s1, 64 }
  0x14   :  { %p1068_p8 = scmp.ne.s32.totalorder %s1681_s1, %s1067_s28  ;;  %p1071_p9 = scmp.lt.u32.totalorder %s1067_s28, %s1681_s1 }
  0x16   :  { %p1073_p10 = pnand %p1071_p9, %p1068_p8 }
  0x18   :  { %1076 = shalt.err (!%p1073_p10)
}
  0x19   :  { %s1077_s6 = scalar_lea.vmem %s28_s15, 64  ;;  %p1082_p12 = scmp.lt.s32.totalorder %s28_s15, %s28_s15 }
  0x1a   :  { %p1078_p11 = scmp.ne.s32.totalorder %s28_s15, %s1077_s6  ;;  %p1083_p13 = scmp.lt.s32.totalorder %s1077_s6, %s1077_s6 }
  0x1c   :  { %p1084_p0 = por %p1083_p13, %p1082_p12 }
  0x1e   :  { %p1085_p1 = pnand %p1084_p0, %p1078_p11 }
  0x20   :  { %1088 = shalt.err (!%p1085_p1)
}
  0x21   :  { %30 = dma.hbm_to_vmem [thread:$0]  %s1681_s1, 64, %s28_s15, [#allocation8]  }
  0x22   :  { %1111 = dma.done.wait [#allocation5], 256  }
  0x23   :  { %1112 = vsyncadd [#allocation5], 4294967040 }
  0x24   :  { %1113 = dma.done.wait [#allocation8], 64  }
  0x25   :  { %1114 = vsyncadd [#allocation8], 4294967232  ;;  %v53_v0 = vld [vmem:[#allocation4 + $0x8] sm:$0xff]  ;;  %v52_v1 = vld [vmem:[#allocation4] sm:$0xff]  ;;  %s1119_s8 = smov 1   ;;  %s1120_s1 = smov 16   ;;  %v39_v4 = vlaneseq }
  0x26   :  { %183 = vrot.lane.b32.xlu1 %v53_v0, %s1119_s8  ;;  %222 = vst [vmem:[#allocation2 + $0x50] sm:$0xf] %v53_v0  ;;  %179 = vrot.lane.b32.xlu0 %v52_v1, %s1119_s8  ;;  %220 = vst [vmem:[#allocation2 + $0x40] sm:$0xf] %v52_v1  ;;  %v57_v2 = vcombine.high %v53_v0, %v53_v0  ;;  %v56_v3 = vcombine.high %v52_v1, %v52_v1  ;;  %s1121_s9 = smov 17   ;;  %s1122_s10 = smov 15  }
  0x27   :  { %s1123_s11 = smov 127   ;;  %s1124_s12 = smov 112   ;;  %vm378_vm0 = vcmp.lt.s32.totalorder %v39_v4, 512  ;;  %v1125_v5 = vmov 1.0   ;;  %v1128_v6 = vmov 0.0   ;;  %v1208_v7 = vand.u32 127, %v39_v4 }
  0x28   :  { %223 = vst [vmem:[#allocation2 + $0x58] sm:$0xf] %v57_v2  ;;  %221 = vst [vmem:[#allocation2 + $0x48] sm:$0xf] %v56_v3  ;;  %s1126_s13 = smov 113   ;;  %s1127_s14 = smov 111   ;;  %485 = vmatprep.mubr.f32.mxu0 %v1128_v6  ;;  %556 = vmatprep.mubr.f32.mxu1 %v1128_v6 }
  0x29   :  { %381 = vst.msk [vmem:[#allocation2 + $0x84] ss:$8 sm:$0xf] %vm378_vm0, %v1125_v5  ;;  %780 = vst.msk [vmem:[#allocation3 + $0x84] ss:$8 sm:$0xf] %vm378_vm0, %v1125_v5 }
  0x2a   :  { %185 = vrot.lane.b32.xlu1 %v57_v2, %s1119_s8  ;;  %101 = vrot.lane.b32.xlu0 %v52_v1, %s1120_s1  ;;  %v1211_v8 = vadd.s32 384, %v1208_v7  ;;  %v48_v9 = vand.u32 15, %v1208_v7  ;;  %v1216_v11 = vadd.s32 128, %v1208_v7  ;;  %v1219_v12 = vadd.s32 256, %v1208_v7  ;;  %s1129_s17 = smov [#allocation9]  }
  0x2b   :  { %vm1693_vm1 = vcmp.lt.s32.totalorder %v1208_v7, 1  ;;  %vm1692_vm4 = vcmp.lt.s32.totalorder %v1208_v7, 16  ;;  %v44_v25 = vand.u32 255, %v1208_v7  ;;  %v1707_v29 = vmov 0  ;;  %s976_s18 = sshll.u32 %s1129_s17, 4  ;;  %s977_s18 = int_to_ptr.vmem [resolvable:$true] %s976_s18 }
  0x2c   :  { %v51_v10 = vand.u32 15, %v1211_v8  ;;  %vm1224_vm2 = vcmp.ge.s32.totalorder %v48_v9, 1  ;;  %v49_v17 = vand.u32 15, %v1216_v11  ;;  %v50_v18 = vand.u32 15, %v1219_v12  ;;  %p1094_p3 = scmp.lt.s32.totalorder %s977_s18, %s977_s18 }
  0x2d   :  { %v46_v26 = vand.u32 255, %v1219_v12  ;;  %vm1269_vm7 = vcmp.ge.s32.totalorder %v44_v25, 16  ;;  %vm1686_vm9 = vcmp.lt.s32.totalorder %v1208_v7, 17  ;;  %vm1690_vm12 = vcmp.lt.s32.totalorder %v1208_v7, 15 }
  0x2e   :  { %103 = vrot.lane.b32.xlu1 %v56_v3, %s1120_s1  ;;  %181 = vrot.lane.b32.xlu0 %v56_v3, %s1119_s8  ;;  %vm1230_vm3 = vcmp.ge.s32.totalorder %v51_v10, 1  ;;  %vm1249_vm5 = vcmp.ge.s32.totalorder %v49_v17, 1  ;;  %vm1255_vm6 = vcmp.ge.s32.totalorder %v50_v18, 1  ;;  %vm1684_vm10 = vmand %vm1269_vm7, %vm1224_vm2  ;;  %vm1321_vm13 = vcmp.lt.s32.totalorder %v49_v17, 15 }
  0x2f   :  { %v1708_v29 = vsel %vm1249_vm5, 4294967295, %v1707_v29  ;;  %vm1273_vm8 = vcmp.ge.s32.totalorder %v46_v26, 16  ;;  %vm1327_vm14 = vcmp.lt.s32.totalorder %v48_v9, 15  ;;  %vm1333_vm15 = vcmp.lt.s32.totalorder %v50_v18, 15  ;;  %v782_v9 = vld [vmem:[%s1682_s2] sm:$0xf] }
  0x30   :  { %vm1685_vm11 = vmand %vm1273_vm8, %vm1255_vm6  ;;  %s1089_s2 = scalar_lea.vmem %s977_s18, 256 }
  0x31   :  { %vm1687_vm0 = vmand %vm1269_vm7, %vm1327_vm14  ;;  %p1090_p2 = scmp.ne.s32.totalorder %s977_s18, %s1089_s2  ;;  %p1095_p4 = scmp.lt.s32.totalorder %s1089_s2, %s1089_s2 }
  0x32   :  { %107 = vrot.lane.b32.xlu1 %v57_v2, %s1120_s1  ;;  %105 = vrot.lane.b32.xlu0 %v53_v0, %s1120_s1 }
  0x33   :  { %p1096_p5 = por %p1095_p4, %p1094_p3 }
  0x35   :  { %p1097_p6 = pnand %p1096_p5, %p1090_p2 }
  0x36   :  { %62 = vrot.lane.b32.xlu1 %v56_v3, %s1121_s9  ;;  %60 = vrot.lane.b32.xlu0 %v52_v1, %s1121_s9 }
  0x3a   :  { %66 = vrot.lane.b32.xlu1 %v57_v2, %s1121_s9  ;;  %64 = vrot.lane.b32.xlu0 %v53_v0, %s1121_s9 }
  0x3e   :  { %144 = vrot.lane.b32.xlu1 %v56_v3, %s1122_s10  ;;  %142 = vrot.lane.b32.xlu0 %v52_v1, %s1122_s10 }
  0x42   :  { %148 = vrot.lane.b32.xlu1 %v57_v2, %s1122_s10  ;;  %146 = vrot.lane.b32.xlu0 %v53_v0, %s1122_s10 }
  0x46   :  { %226 = vrot.lane.b32.xlu1 %v56_v3, %s1123_s11  ;;  %224 = vrot.lane.b32.xlu0 %v52_v1, %s1123_s11 }
  0x4a   :  { %230 = vrot.lane.b32.xlu1 %v57_v2, %s1123_s11  ;;  %228 = vrot.lane.b32.xlu0 %v53_v0, %s1123_s11 }
  0x4e   :  { %304 = vrot.lane.b32.xlu1 %v56_v3, %s1124_s12  ;;  %302 = vrot.lane.b32.xlu0 %v52_v1, %s1124_s12 }
  0x52   :  { %308 = vrot.lane.b32.xlu1 %v57_v2, %s1124_s12  ;;  %306 = vrot.lane.b32.xlu0 %v53_v0, %s1124_s12 }
  0x56   :  { %267 = vrot.lane.b32.xlu1 %v56_v3, %s1126_s13  ;;  %265 = vrot.lane.b32.xlu0 %v52_v1, %s1126_s13 }
  0x5a   :  { %271 = vrot.lane.b32.xlu1 %v57_v2, %s1126_s13  ;;  %269 = vrot.lane.b32.xlu0 %v53_v0, %s1126_s13 }
  0x5e   :  { %345 = vrot.lane.b32.xlu1 %v56_v3, %s1127_s14  ;;  %343 = vrot.lane.b32.xlu0 %v52_v1, %s1127_s14 }
  0x62   :  { %349 = vrot.lane.b32.xlu1 %v57_v2, %s1127_s14  ;;  %347 = vrot.lane.b32.xlu0 %v53_v0, %s1127_s14 }
  0x98   :  { %v184_v13 = vpop.permute.xlu1 %183  ;;  %v180_v14 = vpop.permute.xlu0 %179 }
  0x9c   :  { %v186_v19 = vpop.permute.xlu1 %185  ;;  %v102_v20 = vpop.permute.xlu0 %101 }
  0x9d   :  { %v188_v21 = vsel %vm1693_vm1, %v184_v13, %v186_v19  ;;  %v191_v22 = vsel %vm1693_vm1, %v186_v19, %v180_v14 }
  0x9e   :  { %v200_v23 = vsel %vm1224_vm2, %v191_v22, 0.0  ;;  %v203_v24 = vsel %vm1230_vm3, %v188_v21, 0.0 }
  0x9f   :  { %v208_v27 = vrot.slane %v200_v23, 4  ;;  %v211_v28 = vrot.slane %v203_v24, 4 }
  0xa0   :  { %v104_v31 = vpop.permute.xlu1 %103  ;;  %v182_v32 = vpop.permute.xlu0 %181 }
  0xa1   :  { %216 = vst [vmem:[#allocation2 + $0x20] sm:$0xf0] %v208_v27  ;;  %219 = vst [vmem:[#allocation2 + $0x38] sm:$0xf0] %v211_v28  ;;  %v112_v33 = vsel %vm1692_vm4, %v102_v20, %v104_v31  ;;  %v189_v34 = vsel %vm1693_vm1, %v182_v32, %v184_v13  ;;  %v190_v35 = vsel %vm1693_vm1, %v180_v14, %v182_v32  ;;  %vm1700_vm1 = vcmp.lt.s32.totalorder %v1208_v7, 111 }
  0xa2   :  { %v131_v36 = vrot.slane %v112_v33, 4  ;;  %v201_v37 = vsel %vm1249_vm5, %v190_v35, 0.0  ;;  %v202_v38 = vsel %vm1255_vm6, %v189_v34, 0.0  ;;  %v47_v35 = vand.u32 255, %v1211_v8 }
  0xa3   :  { %v209_v39 = vrot.slane %v201_v37, 4  ;;  %v210_v40 = vrot.slane %v202_v38, 4 }
  0xa4   :  { %139 = vst [vmem:[#allocation2 + $0x8] sm:$0xf0] %v131_v36  ;;  %v108_v43 = vpop.permute.xlu1 %107  ;;  %v106_v44 = vpop.permute.xlu0 %105 }
  0xa5   :  { %217 = vst [vmem:[#allocation2 + $0x28] sm:$0xf0] %v209_v39  ;;  %218 = vst [vmem:[#allocation2 + $0x30] sm:$0xf0] %v210_v40  ;;  %v113_v45 = vsel %vm1692_vm4, %v108_v43, %v102_v20  ;;  %v110_v46 = vsel %vm1692_vm4, %v106_v44, %v108_v43  ;;  %v111_v47 = vsel %vm1692_vm4, %v104_v31, %v106_v44  ;;  %v45_v40 = vand.u32 255, %v1216_v11 }
  0xa6   :  { %v122_v48 = vsel %vm1269_vm7, %v113_v45, 0.0  ;;  %v124_v49 = vsel %vm1273_vm8, %v111_v47, 0.0  ;;  %v133_v50 = vrot.slane %v110_v46, 4 }
  0xa7   :  { %v130_v51 = vrot.slane %v122_v48, 4  ;;  %v132_v52 = vrot.slane %v124_v49, 4 }
  0xa8   :  { %141 = vst [vmem:[#allocation2 + $0x18] sm:$0xf0] %v133_v50  ;;  %v63_v53 = vpop.permute.xlu1 %62  ;;  %v61_v54 = vpop.permute.xlu0 %60 }
  0xa9   :  { %138 = vst [vmem:[#allocation2] sm:$0xf0] %v130_v51  ;;  %140 = vst [vmem:[#allocation2 + $0x10] sm:$0xf0] %v132_v52  ;;  %v71_v55 = vsel %vm1686_vm9, %v61_v54, %v63_v53 }
  0xaa   :  { %v94_v56 = vsel %vm1249_vm5, %v71_v55, 0.0 }
  0xab   :  { %98 = vst [vmem:[#allocation2 + $0x8] sm:$0xf] %v94_v56 }
  0xac   :  { %v67_v57 = vpop.permute.xlu1 %66  ;;  %v65_v58 = vpop.permute.xlu0 %64 }
  0xad   :  { %v72_v59 = vsel %vm1686_vm9, %v67_v57, %v61_v54  ;;  %v69_v60 = vsel %vm1686_vm9, %v65_v58, %v67_v57  ;;  %v70_v61 = vsel %vm1686_vm9, %v63_v53, %v65_v58  ;;  %vm1688_vm9 = vcmp.lt.s32.totalorder %v1208_v7, 127 }
  0xae   :  { %v93_v62 = vsel %vm1684_vm10, %v72_v59, 0.0  ;;  %v95_v63 = vsel %vm1685_vm11, %v70_v61, 0.0  ;;  %v96_v0 = vsel %vm1230_vm3, %v69_v60, 0.0  ;;  %vm1347_vm10 = vcmp.lt.s32.totalorder %v51_v10, 15  ;;  %vm1689_vm11 = vmand %vm1273_vm8, %vm1333_vm15 }
  0xaf   :  { %97 = vst [vmem:[#allocation2] sm:$0xf] %v93_v62  ;;  %99 = vst [vmem:[#allocation2 + $0x10] sm:$0xf] %v95_v63 }
  0xb0   :  { %100 = vst [vmem:[#allocation2 + $0x18] sm:$0xf] %v96_v0  ;;  %v145_v3 = vpop.permute.xlu1 %144  ;;  %v143_v4 = vpop.permute.xlu0 %142 }
  0xb1   :  { %v153_v13 = vsel %vm1690_vm12, %v143_v4, %v145_v3 }
  0xb2   :  { %v172_v14 = vsel %vm1321_vm13, %v153_v13, 0.0  ;;  %v385_v27 = vld [vmem:[#allocation2 + $0x8] sm:$0xff] }
  0xb3   :  { %176 = vst [vmem:[#allocation2 + $0x28] sm:$0xf] %v172_v14 }
  0xb4   :  { %v149_v12 = vpop.permute.xlu1 %148  ;;  %v147_v17 = vpop.permute.xlu0 %146 }
  0xb5   :  { %v154_v18 = vsel %vm1690_vm12, %v149_v12, %v143_v4  ;;  %v151_v19 = vsel %vm1690_vm12, %v147_v17, %v149_v12  ;;  %v152_v20 = vsel %vm1690_vm12, %v145_v3, %v147_v17  ;;  %vm1701_vm12 = vcmp.lt.s32.totalorder %v1208_v7, 113 }
  0xb6   :  { %v171_v10 = vsel %vm1687_vm0, %v154_v18, 0.0  ;;  %v173_v21 = vsel %vm1689_vm11, %v152_v20, 0.0  ;;  %v174_v22 = vsel %vm1347_vm10, %v151_v19, 0.0  ;;  %vm1691_vm0 = vcmp.lt.s32.totalorder %v1208_v7, 112  ;;  %v384_v39 = vld [vmem:[#allocation2] sm:$0xff]  ;;  %v386_v53 = vld [vmem:[#allocation2 + $0x10] sm:$0xff] }
  0xb7   :  { %175 = vst [vmem:[#allocation2 + $0x20] sm:$0xf] %v171_v10  ;;  %177 = vst [vmem:[#allocation2 + $0x30] sm:$0xf] %v173_v21  ;;  %v387_v52 = vld [vmem:[#allocation2 + $0x18] sm:$0xff]  ;;  %vm1399_vm11 = vcmp.lt.s32.totalorder %v45_v40, 240 }
  0xb8   :  { %178 = vst [vmem:[#allocation2 + $0x38] sm:$0xf] %v174_v22  ;;  %v227_v23 = vpop.permute.xlu1 %226  ;;  %v225_v24 = vpop.permute.xlu0 %224  ;;  %vm1695_vm4 = vmand %vm1399_vm11, %vm1249_vm5 }
  0xb9   :  { %v235_v25 = vsel %vm1688_vm9, %v225_v24, %v227_v23 }
  0xba   :  { %v245_v26 = vsel %vm1327_vm14, %v235_v25, 0.0  ;;  %v389_v28 = vld [vmem:[#allocation2 + $0x28] sm:$0xff] }
  0xbb   :  { %v253_v31 = vrot.slane %v245_v26, 4  ;;  %v998_v32 = vpack.c.bf16 %v389_v28, %v385_v27 }
  0xbc   :  { %v231_v33 = vpop.permute.xlu1 %230  ;;  %v229_v34 = vpop.permute.xlu0 %228 }
  0xbd   :  { %261 = vst [vmem:[#allocation2 + $0x40] sm:$0xf0] %v253_v31  ;;  %v236_v36 = vsel %vm1688_vm9, %v231_v33, %v225_v24  ;;  %v233_v37 = vsel %vm1688_vm9, %v229_v34, %v231_v33  ;;  %v234_v38 = vsel %vm1688_vm9, %v227_v23, %v229_v34  ;;  %999 = vmatprep.subr.bf16.mxu0 %v998_v32  ;;  %vm1395_vm9 = vcmp.lt.s32.totalorder %v47_v35, 240 }
  0xbe   :  { %v248_v43 = vsel %vm1347_vm10, %v236_v36, 0.0  ;;  %v246_v8 = vsel %vm1321_vm13, %v234_v38, 0.0  ;;  %v247_v44 = vsel %vm1333_vm15, %v233_v37, 0.0  ;;  %v388_v45 = vld [vmem:[#allocation2 + $0x20] sm:$0xff]  ;;  %v390_v47 = vld [vmem:[#allocation2 + $0x30] sm:$0xff] }
  0xbf   :  { %v391_v46 = vld [vmem:[#allocation2 + $0x38] sm:$0xff]  ;;  %v256_v48 = vrot.slane %v248_v43, 4  ;;  %v254_v49 = vrot.slane %v246_v8, 4  ;;  %v255_v50 = vrot.slane %v247_v44, 4  ;;  %v1000_v51 = vpack.c.bf16 %v388_v45, %v384_v39 }
  0xc0   :  { %v305_v54 = vpop.permute.xlu1 %304  ;;  %v303_v11 = vpop.permute.xlu0 %302  ;;  %v1006_v55 = vpack.c.bf16 %v391_v46, %v387_v52  ;;  %v1008_v56 = vpack.c.bf16 %v390_v47, %v386_v53 }
  0xc1   :  { %264 = vst [vmem:[#allocation2 + $0x58] sm:$0xf0] %v256_v48  ;;  %262 = vst [vmem:[#allocation2 + $0x48] sm:$0xf0] %v254_v49  ;;  %v313_v57 = vsel %vm1691_vm0, %v303_v11, %v305_v54  ;;  %1001 = vmatpush1.bf16.msra.mxu0 %v1000_v51 }
  0xc2   :  { %263 = vst [vmem:[#allocation2 + $0x50] sm:$0xf0] %v255_v50  ;;  %v331_v58 = vrot.slane %v313_v57, 4  ;;  %1007 = vmatprep.subr.bf16.mxu1 %v1006_v55  ;;  %v383_v55 = vld [vmem:[#allocation7] sm:$0xf] }
  0xc3   :  { %1009 = vmatpush1.bf16.msra.mxu1 %v1008_v56 }
  0xc4   :  { %339 = vst [vmem:[#allocation2 + $0x60] sm:$0xf0] %v331_v58  ;;  %v309_v61 = vpop.permute.xlu1 %308  ;;  %v307_v62 = vpop.permute.xlu0 %306  ;;  %v392_v53 = vld [vmem:[#allocation2 + $0x40] sm:$0xff] }
  0xc5   :  { %v314_v63 = vsel %vm1691_vm0, %v309_v61, %v303_v11  ;;  %v311_v0 = vsel %vm1691_vm0, %v307_v62, %v309_v61  ;;  %v312_v3 = vsel %vm1691_vm0, %v305_v54, %v307_v62  ;;  %vm1694_vm0 = vmand %vm1395_vm9, %vm1230_vm3 }
  0xc6   :  { %v326_v4 = vsel %vm1395_vm9, %v314_v63, 0.0  ;;  %v324_v13 = vsel %vm1399_vm11, %v312_v3, 0.0  ;;  %v333_v14 = vrot.slane %v311_v0, 4 }
  0xc7   :  { %v334_v12 = vrot.slane %v326_v4, 4  ;;  %v332_v17 = vrot.slane %v324_v13, 4 }
  0xc8   :  { %341 = vst [vmem:[#allocation2 + $0x70] sm:$0xf0] %v333_v14  ;;  %v268_v18 = vpop.permute.xlu1 %267  ;;  %v266_v19 = vpop.permute.xlu0 %265  ;;  %v393_v37 = vld [vmem:[#allocation2 + $0x48] sm:$0xff]  ;;  %v395_v43 = vld [vmem:[#allocation2 + $0x58] sm:$0xff] }
  0xc9   :  { %342 = vst [vmem:[#allocation2 + $0x78] sm:$0xf0] %v334_v12  ;;  %340 = vst [vmem:[#allocation2 + $0x68] sm:$0xf0] %v332_v17  ;;  %v276_v20 = vsel %vm1701_vm12, %v266_v19, %v268_v18  ;;  %v394_v44 = vld [vmem:[#allocation2 + $0x50] sm:$0xff] }
  0xca   :  { %v294_v10 = vsel %vm1224_vm2, %v276_v20, 0.0 }
  0xcb   :  { %298 = vst [vmem:[#allocation2 + $0x60] sm:$0xf] %v294_v10 }
  0xcc   :  { %v272_v21 = vpop.permute.xlu1 %271  ;;  %v270_v22 = vpop.permute.xlu0 %269 }
  0xcd   :  { %v277_v23 = vsel %vm1701_vm12, %v272_v21, %v266_v19  ;;  %v274_v24 = vsel %vm1701_vm12, %v270_v22, %v272_v21  ;;  %v275_v25 = vsel %vm1701_vm12, %v268_v18, %v270_v22 }
  0xce   :  { %v297_v26 = vsel %vm1694_vm0, %v277_v23, 0.0  ;;  %v295_v27 = vsel %vm1695_vm4, %v275_v25, 0.0  ;;  %v296_v28 = vsel %vm1255_vm6, %v274_v24, 0.0  ;;  %vm1696_vm0 = vmand %vm1395_vm9, %vm1347_vm10 }
  0xcf   :  { %301 = vst [vmem:[#allocation2 + $0x78] sm:$0xf] %v297_v26  ;;  %299 = vst [vmem:[#allocation2 + $0x68] sm:$0xf] %v295_v27 }
  0xd0   :  { %300 = vst [vmem:[#allocation2 + $0x70] sm:$0xf] %v296_v28  ;;  %v346_v31 = vpop.permute.xlu1 %345  ;;  %v344_v32 = vpop.permute.xlu0 %343  ;;  %vm1697_vm4 = vmand %vm1399_vm11, %vm1321_vm13 }
  0xd1   :  { %v354_v33 = vsel %vm1700_vm1, %v344_v32, %v346_v31 }
  0xd2   :  { %v368_v34 = vsel %vm1327_vm14, %v354_v33, 0.0  ;;  %v396_v8 = vld [vmem:[#allocation2 + $0x60] sm:$0xff] }
  0xd3   :  { %372 = vst [vmem:[#allocation2 + $0x80] sm:$0xf] %v368_v34  ;;  %v1004_v11 = vpack.c.bf16 %v396_v8, %v392_v53 }
  0xd4   :  { %v350_v35 = vpop.permute.xlu1 %349  ;;  %v348_v36 = vpop.permute.xlu0 %347 }
  0xd5   :  { %v355_v38 = vsel %vm1700_vm1, %v350_v35, %v344_v32  ;;  %v352_v39 = vsel %vm1700_vm1, %v348_v36, %v350_v35  ;;  %v353_v40 = vsel %vm1700_vm1, %v346_v31, %v348_v36 }
  0xd6   :  { %v371_v45 = vsel %vm1696_vm0, %v355_v38, 0.0  ;;  %v369_v46 = vsel %vm1697_vm4, %v353_v40, 0.0  ;;  %v370_v47 = vsel %vm1333_vm15, %v352_v39, 0.0  ;;  %v397_v48 = vld [vmem:[#allocation2 + $0x68] sm:$0xff]  ;;  %v399_v49 = vld [vmem:[#allocation2 + $0x78] sm:$0xff]  ;;  %vm1699_vm0 = vcmask 1044480  }
  0xd7   :  { %v398_v50 = vld [vmem:[#allocation2 + $0x70] sm:$0xff]  ;;  %375 = vst [vmem:[#allocation2 + $0x98] sm:$0xf] %v371_v45  ;;  %373 = vst [vmem:[#allocation2 + $0x88] sm:$0xf] %v369_v46  ;;  %v1002_v51 = vpack.c.bf16 %v397_v48, %v393_v37  ;;  %v1010_v52 = vpack.c.bf16 %v399_v49, %v395_v43  ;;  %vm1698_vm4 = vcmask 302080  }
  0xd8   :  { %374 = vst [vmem:[#allocation2 + $0x90] sm:$0xf] %v370_v47  ;;  %v1012_v54 = vpack.c.bf16 %v398_v50, %v394_v44 }
  0xd9   :  { %1003 = vmatprep.subr.bf16.mxu0 %v1002_v51  ;;  %1011 = vmatprep.subr.bf16.mxu1 %v1010_v52 }
  0xda   :  { %1005 = vmatpush1.bf16.msra.mxu0 %v1004_v11  ;;  %1013 = vmatpush1.bf16.msra.mxu1 %v1012_v54  ;;  %v400_v61 = vld [vmem:[#allocation2 + $0x80] sm:$0x1f] }
  0xde   :  { %v401_v56 = vld [vmem:[#allocation2 + $0x88] sm:$0x1f]  ;;  %v403_v57 = vld [vmem:[#allocation2 + $0x98] sm:$0x1f] }
  0xdf   :  { %v402_v58 = vld [vmem:[#allocation2 + $0x90] sm:$0x1f]  ;;  %986 = vmatprep.subr.msk.mxu0 %vm1699_vm0, %v401_v56  ;;  %989 = vmatprep.subr.msk.mxu1 %vm1699_vm0, %v403_v57 }
  0xe0   :  { %987 = vmatpush1.msk.msra.mxu0 %vm1699_vm0, %v400_v61  ;;  %990 = vmatpush1.msk.msra.mxu1 %vm1699_vm0, %v402_v58 }
  0xe1   :  { %988 = vmatmul.mubr.msk.f32.vlgmr.msra.gmra.mrb[0].mxu0 %vm1698_vm4, %v383_v55  ;;  %991 = vmatmul.mubr.msk.f32.vlgmr.msra.gmra.mrb[0].mxu1 %vm1698_vm4, %v383_v55  ;;  %vm1727_vm4 = vcmp.lt.s32.totalorder %v1208_v7, 1 }
  0xe2   :  { %882 = vmatprep.mubr.f32.mxu0 %v1128_v6  ;;  %953 = vmatprep.mubr.f32.mxu1 %v1128_v6  ;;  %vm1728_vm0 = vmmov %vm1727_vm4 }
  0xe3   :  { %vm1729_vm1 = vmmov %vm1728_vm0 }
  0xe4   :  { %vm1730_vm12 = vmmov %vm1728_vm0 }
 0x1b4   :  { %v487_v62 = vpop.f32.mrb[0].mxu0  ;;  %v558_v63 = vpop.f32.mrb[0].mxu1 }
 0x1b5   :  { %v563_v0 = vmax.f32 %v487_v62, 0.0  ;;  %v489_v3 = vpop.f32.mrb[1].mxu0  ;;  %v565_v4 = vmax.f32 %v558_v63, 0.0  ;;  %v560_v13 = vpop.f32.mrb[1].mxu1 }
 0x1b6   :  { %v564_v14 = vmax.f32 %v489_v3, 0.0  ;;  %v566_v12 = vmax.f32 %v560_v13, 0.0 }
 0x1b7   :  { %671 = vst [vmem:[#allocation3 + $0x40] sm:$0xf] %v563_v0  ;;  %673 = vst [vmem:[#allocation3 + $0x50] sm:$0xf] %v565_v4  ;;  %639 = vrot.lane.b32.xlu0 %v563_v0, %s1119_s8 }
 0x1b8   :  { %672 = vst [vmem:[#allocation3 + $0x48] sm:$0xf] %v564_v14  ;;  %674 = vst [vmem:[#allocation3 + $0x58] sm:$0xf] %v566_v12  ;;  %641 = vrot.lane.b32.xlu1 %v564_v14, %s1119_s8 }
 0x1bb   :  { %643 = vrot.lane.b32.xlu0 %v565_v4, %s1119_s8 }
 0x1bc   :  { %645 = vrot.lane.b32.xlu1 %v566_v12, %s1119_s8 }
 0x1bf   :  { %587 = vrot.lane.b32.xlu0 %v563_v0, %s1120_s1 }
 0x1c0   :  { %589 = vrot.lane.b32.xlu1 %v564_v14, %s1120_s1 }
 0x1c3   :  { %591 = vrot.lane.b32.xlu0 %v565_v4, %s1120_s1 }
 0x1c4   :  { %593 = vrot.lane.b32.xlu1 %v566_v12, %s1120_s1 }
 0x1c7   :  { %567 = vrot.lane.b32.xlu0 %v563_v0, %s1121_s9 }
 0x1c8   :  { %569 = vrot.lane.b32.xlu1 %v564_v14, %s1121_s9 }
 0x1cb   :  { %571 = vrot.lane.b32.xlu0 %v565_v4, %s1121_s9 }
 0x1cc   :  { %573 = vrot.lane.b32.xlu1 %v566_v12, %s1121_s9 }
 0x1cf   :  { %619 = vrot.lane.b32.xlu0 %v563_v0, %s1122_s10 }
 0x1d0   :  { %621 = vrot.lane.b32.xlu1 %v564_v14, %s1122_s10 }
 0x1d3   :  { %623 = vrot.lane.b32.xlu0 %v565_v4, %s1122_s10 }
 0x1d4   :  { %625 = vrot.lane.b32.xlu1 %v566_v12, %s1122_s10 }
 0x1d7   :  { %675 = vrot.lane.b32.xlu0 %v563_v0, %s1123_s11 }
 0x1d8   :  { %677 = vrot.lane.b32.xlu1 %v564_v14, %s1123_s11 }
 0x1db   :  { %679 = vrot.lane.b32.xlu0 %v565_v4, %s1123_s11 }
 0x1dc   :  { %681 = vrot.lane.b32.xlu1 %v566_v12, %s1123_s11 }
 0x1df   :  { %727 = vrot.lane.b32.xlu0 %v563_v0, %s1124_s12 }
 0x1e0   :  { %729 = vrot.lane.b32.xlu1 %v564_v14, %s1124_s12 }
 0x1e3   :  { %731 = vrot.lane.b32.xlu0 %v565_v4, %s1124_s12 }
 0x1e4   :  { %733 = vrot.lane.b32.xlu1 %v566_v12, %s1124_s12 }
 0x1e7   :  { %707 = vrot.lane.b32.xlu0 %v563_v0, %s1126_s13 }
 0x1e8   :  { %709 = vrot.lane.b32.xlu1 %v564_v14, %s1126_s13 }
 0x1eb   :  { %711 = vrot.lane.b32.xlu0 %v565_v4, %s1126_s13 }
 0x1ec   :  { %713 = vrot.lane.b32.xlu1 %v566_v12, %s1126_s13 }
 0x1ef   :  { %759 = vrot.lane.b32.xlu0 %v563_v0, %s1127_s14 }
 0x1f0   :  { %761 = vrot.lane.b32.xlu1 %v564_v14, %s1127_s14 }
 0x1f3   :  { %763 = vrot.lane.b32.xlu0 %v565_v4, %s1127_s14 }
 0x1f4   :  { %765 = vrot.lane.b32.xlu1 %v566_v12, %s1127_s14 }
 0x229   :  { %v640_v6 = vpop.permute.xlu0 %639 }
 0x22a   :  { %v642_v17 = vpop.permute.xlu1 %641 }
 0x22b   :  { %v649_v18 = vsel %vm1727_vm4, %v640_v6, %v642_v17  ;;  %vm1731_vm4 = vcmp.lt.s32.totalorder %v1208_v7, 16 }
 0x22c   :  { %v652_v19 = vsel %vm1249_vm5, %v649_v18, 0.0 }
 0x22d   :  { %v660_v20 = vrot.slane %v652_v19, 4  ;;  %v644_v10 = vpop.permute.xlu0 %643 }
 0x22e   :  { %v648_v21 = vsel %vm1728_vm0, %v642_v17, %v644_v10  ;;  %v646_v22 = vpop.permute.xlu1 %645 }
 0x22f   :  { %668 = vst [vmem:[#allocation3 + $0x28] sm:$0xf0] %v660_v20  ;;  %v653_v23 = vsel %vm1255_vm6, %v648_v21, 0.0  ;;  %v647_v24 = vsel %vm1729_vm1, %v644_v10, %v646_v22  ;;  %v650_v25 = vsel %vm1730_vm12, %v646_v22, %v640_v6  ;;  %vm1732_vm1 = vmmov %vm1731_vm4 }
 0x230   :  { %v661_v26 = vrot.slane %v653_v23, 4  ;;  %v651_v27 = vsel %vm1224_vm2, %v650_v25, 0.0  ;;  %v654_v28 = vsel %vm1230_vm3, %v647_v24, 0.0  ;;  %vm1733_vm12 = vmmov %vm1732_vm1 }
 0x231   :  { %v659_v31 = vrot.slane %v651_v27, 4  ;;  %v662_v32 = vrot.slane %v654_v28, 4  ;;  %v588_v33 = vpop.permute.xlu0 %587  ;;  %vm1734_vm0 = vmmov %vm1732_vm1 }
 0x232   :  { %669 = vst [vmem:[#allocation3 + $0x30] sm:$0xf0] %v661_v26  ;;  %v590_v34 = vpop.permute.xlu1 %589 }
 0x233   :  { %667 = vst [vmem:[#allocation3 + $0x20] sm:$0xf0] %v659_v31  ;;  %670 = vst [vmem:[#allocation3 + $0x38] sm:$0xf0] %v662_v32  ;;  %v597_v35 = vsel %vm1731_vm4, %v588_v33, %v590_v34  ;;  %vm1735_vm4 = vcmp.lt.s32.totalorder %v1208_v7, 17 }
 0x234   :  { %v608_v36 = vrot.slane %v597_v35, 4 }
 0x235   :  { %v592_v37 = vpop.permute.xlu0 %591 }
 0x236   :  { %616 = vst [vmem:[#allocation3 + $0x8] sm:$0xf0] %v608_v36  ;;  %v596_v38 = vsel %vm1732_vm1, %v590_v34, %v592_v37  ;;  %v594_v39 = vpop.permute.xlu1 %593  ;;  %vm1736_vm1 = vmmov %vm1735_vm4 }
 0x237   :  { %v601_v40 = vsel %vm1273_vm8, %v596_v38, 0.0  ;;  %v595_v43 = vsel %vm1733_vm12, %v592_v37, %v594_v39  ;;  %v598_v8 = vsel %vm1734_vm0, %v594_v39, %v588_v33  ;;  %vm1737_vm12 = vmand %vm1273_vm8, %vm1255_vm6 }
 0x238   :  { %v609_v44 = vrot.slane %v601_v40, 4  ;;  %v599_v45 = vsel %vm1269_vm7, %v598_v8, 0.0  ;;  %v610_v46 = vrot.slane %v595_v43, 4  ;;  %vm1738_vm0 = vmmov %vm1736_vm1 }
 0x239   :  { %v607_v47 = vrot.slane %v599_v45, 4  ;;  %v568_v48 = vpop.permute.xlu0 %567 }
 0x23a   :  { %617 = vst [vmem:[#allocation3 + $0x10] sm:$0xf0] %v609_v44  ;;  %618 = vst [vmem:[#allocation3 + $0x18] sm:$0xf0] %v610_v46  ;;  %v570_v49 = vpop.permute.xlu1 %569 }
 0x23b   :  { %615 = vst [vmem:[#allocation3] sm:$0xf0] %v607_v47  ;;  %v577_v50 = vsel %vm1735_vm4, %v568_v48, %v570_v49  ;;  %vm1739_vm4 = vmmov %vm1738_vm0 }
 0x23c   :  { %v580_v51 = vsel %vm1249_vm5, %v577_v50, 0.0  ;;  %vm1740_vm5 = vmand %vm1269_vm7, %vm1224_vm2 }
 0x23d   :  { %584 = vst [vmem:[#allocation3 + $0x8] sm:$0xf] %v580_v51  ;;  %v572_v52 = vpop.permute.xlu0 %571 }
 0x23e   :  { %v576_v53 = vsel %vm1736_vm1, %v570_v49, %v572_v52  ;;  %v574_v54 = vpop.permute.xlu1 %573  ;;  %vm1741_vm1 = vcmp.lt.s32.totalorder %v1208_v7, 15 }
 0x23f   :  { %v581_v11 = vsel %vm1737_vm12, %v576_v53, 0.0  ;;  %v575_v55 = vsel %vm1738_vm0, %v572_v52, %v574_v54  ;;  %v578_v56 = vsel %vm1739_vm4, %v574_v54, %v568_v48  ;;  %vm1742_vm12 = vmmov %vm1741_vm1 }
 0x240   :  { %585 = vst [vmem:[#allocation3 + $0x10] sm:$0xf] %v581_v11  ;;  %v579_v57 = vsel %vm1740_vm5, %v578_v56, 0.0  ;;  %v582_v58 = vsel %vm1230_vm3, %v575_v55, 0.0  ;;  %vm1743_vm5 = vmand %vm1273_vm8, %vm1333_vm15  ;;  %vm1747_vm8 = vcmp.lt.s32.totalorder %v1208_v7, 127 }
 0x241   :  { %583 = vst [vmem:[#allocation3] sm:$0xf] %v579_v57  ;;  %586 = vst [vmem:[#allocation3 + $0x18] sm:$0xf] %v582_v58  ;;  %v620_v61 = vpop.permute.xlu0 %619 }
 0x242   :  { %v622_v62 = vpop.permute.xlu1 %621  ;;  %vm1744_vm0 = vmmov %vm1741_vm1 }
 0x243   :  { %v629_v63 = vsel %vm1741_vm1, %v620_v61, %v622_v62  ;;  %vm1745_vm4 = vmmov %vm1744_vm0 }
 0x244   :  { %v632_v0 = vsel %vm1321_vm13, %v629_v63, 0.0  ;;  %vm1746_vm1 = vmand %vm1269_vm7, %vm1327_vm14  ;;  %v784_v21 = vld [vmem:[#allocation3 + $0x8] sm:$0xff] }
 0x245   :  { %636 = vst [vmem:[#allocation3 + $0x28] sm:$0xf] %v632_v0  ;;  %v624_v3 = vpop.permute.xlu0 %623  ;;  %vm1748_vm7 = vmmov %vm1747_vm8 }
 0x246   :  { %v628_v4 = vsel %vm1742_vm12, %v622_v62, %v624_v3  ;;  %v626_v13 = vpop.permute.xlu1 %625  ;;  %vm1749_vm12 = vmmov %vm1748_vm7 }
 0x247   :  { %v633_v14 = vsel %vm1743_vm5, %v628_v4, 0.0  ;;  %v627_v12 = vsel %vm1744_vm0, %v624_v3, %v626_v13  ;;  %v630_v6 = vsel %vm1745_vm4, %v626_v13, %v620_v61  ;;  %vm1750_vm5 = vmmov %vm1748_vm7  ;;  %v785_v46 = vld [vmem:[#allocation3 + $0x10] sm:$0xff]  ;;  %vm1751_vm0 = vcmp.lt.s32.totalorder %v1208_v7, 112 }
 0x248   :  { %637 = vst [vmem:[#allocation3 + $0x30] sm:$0xf] %v633_v14  ;;  %v631_v17 = vsel %vm1746_vm1, %v630_v6, 0.0  ;;  %v634_v42 = vsel %vm1347_vm10, %v627_v12, 0.0  ;;  %v783_v32 = vld [vmem:[#allocation3] sm:$0xff]  ;;  %v786_v38 = vld [vmem:[#allocation3 + $0x18] sm:$0xff]  ;;  %vm1752_vm4 = vmmov %vm1751_vm0 }
 0x249   :  { %635 = vst [vmem:[#allocation3 + $0x20] sm:$0xf] %v631_v17  ;;  %638 = vst [vmem:[#allocation3 + $0x38] sm:$0xf] %v634_v42  ;;  %v676_v18 = vpop.permute.xlu0 %675 }
 0x24a   :  { %v678_v19 = vpop.permute.xlu1 %677  ;;  %vm1753_vm1 = vmmov %vm1751_vm0 }
 0x24b   :  { %v685_v20 = vsel %vm1747_vm8, %v676_v18, %v678_v19  ;;  %vm1754_vm8 = vmmov %vm1751_vm0 }
 0x24c   :  { %v687_v10 = vsel %vm1327_vm14, %v685_v20, 0.0  ;;  %v788_v22 = vld [vmem:[#allocation3 + $0x28] sm:$0xff] }
 0x24d   :  { %v695_v41 = vrot.slane %v687_v10, 4  ;;  %v680_v23 = vpop.permute.xlu0 %679  ;;  %v1014_v24 = vpack.c.bf16 %v788_v22, %v784_v21 }
 0x24e   :  { %v684_v25 = vsel %vm1748_vm7, %v678_v19, %v680_v23  ;;  %v682_v26 = vpop.permute.xlu1 %681  ;;  %vm1755_vm7 = vcmp.lt.s32.totalorder %v1208_v7, 113 }
 0x24f   :  { %703 = vst [vmem:[#allocation3 + $0x40] sm:$0xf0] %v695_v41  ;;  %v688_v27 = vsel %vm1321_vm13, %v684_v25, 0.0  ;;  %v683_v28 = vsel %vm1749_vm12, %v680_v23, %v682_v26  ;;  %v686_v31 = vsel %vm1750_vm5, %v682_v26, %v676_v18  ;;  %1015 = vmatprep.subr.bf16.mxu0 %v1014_v24  ;;  %v789_v33 = vld [vmem:[#allocation3 + $0x30] sm:$0xff]  ;;  %vm1756_vm12 = vmmov %vm1755_vm7  ;;  %vm1757_vm5 = vnez %v1708_v29 }
 0x250   :  { %v696_v34 = vrot.slane %v688_v27, 4  ;;  %v689_v35 = vsel %vm1333_vm15, %v683_v28, 0.0  ;;  %v690_v36 = vsel %vm1347_vm10, %v686_v31, 0.0  ;;  %v787_v37 = vld [vmem:[#allocation3 + $0x20] sm:$0xff]  ;;  %v790_v39 = vld [vmem:[#allocation3 + $0x38] sm:$0xff]  ;;  %v1024_v48 = vpack.c.bf16 %v789_v33, %v785_v46 }
 0x251   :  { %v697_v40 = vrot.slane %v689_v35, 4  ;;  %v698_v43 = vrot.slane %v690_v36, 4  ;;  %v728_v8 = vpop.permute.xlu0 %727  ;;  %v1016_v44 = vpack.c.bf16 %v787_v37, %v783_v32  ;;  %v1022_v45 = vpack.c.bf16 %v790_v39, %v786_v38 }
 0x252   :  { %704 = vst [vmem:[#allocation3 + $0x48] sm:$0xf0] %v696_v34  ;;  %v730_v47 = vpop.permute.xlu1 %729 }
 0x253   :  { %705 = vst [vmem:[#allocation3 + $0x50] sm:$0xf0] %v697_v40  ;;  %706 = vst [vmem:[#allocation3 + $0x58] sm:$0xf0] %v698_v43  ;;  %v737_v49 = vsel %vm1751_vm0, %v728_v8, %v730_v47  ;;  %1017 = vmatpush1.bf16.msra.mxu0 %v1016_v44  ;;  %1023 = vmatprep.subr.bf16.mxu1 %v1022_v45 }
 0x254   :  { %v747_v50 = vrot.slane %v737_v49, 4  ;;  %1025 = vmatpush1.bf16.msra.mxu1 %v1024_v48  ;;  %vm1758_vm0 = vmand %vm1399_vm11, %vm1757_vm5 }
 0x255   :  { %v732_v51 = vpop.permute.xlu0 %731 }
 0x256   :  { %755 = vst [vmem:[#allocation3 + $0x60] sm:$0xf0] %v747_v50  ;;  %v736_v52 = vsel %vm1752_vm4, %v730_v47, %v732_v51  ;;  %v734_v53 = vpop.permute.xlu1 %733  ;;  %vm1759_vm4 = vmmov %vm1755_vm7  ;;  %v791_v22 = vld [vmem:[#allocation3 + $0x40] sm:$0xff] }
 0x257   :  { %v740_v54 = vsel %vm1399_vm11, %v736_v52, 0.0  ;;  %v735_v11 = vsel %vm1753_vm1, %v732_v51, %v734_v53  ;;  %v738_v55 = vsel %vm1754_vm8, %v734_v53, %v728_v8  ;;  %vm1760_vm1 = vmmov %vm1759_vm4  ;;  %vm1762_vm8 = vcmp.lt.s32.totalorder %v1208_v7, 111 }
 0x258   :  { %v748_v56 = vrot.slane %v740_v54, 4  ;;  %v742_v57 = vsel %vm1395_vm9, %v738_v55, 0.0  ;;  %v749_v58 = vrot.slane %v735_v11, 4 }
 0x259   :  { %v750_v61 = vrot.slane %v742_v57, 4  ;;  %v708_v62 = vpop.permute.xlu0 %707  ;;  %v792_v24 = vld [vmem:[#allocation3 + $0x48] sm:$0xff] }
 0x25a   :  { %756 = vst [vmem:[#allocation3 + $0x68] sm:$0xf0] %v748_v56  ;;  %757 = vst [vmem:[#allocation3 + $0x70] sm:$0xf0] %v749_v58  ;;  %v710_v63 = vpop.permute.xlu1 %709  ;;  %v794_v26 = vld [vmem:[#allocation3 + $0x58] sm:$0xff]  ;;  %v793_v31 = vld [vmem:[#allocation3 + $0x50] sm:$0xff] }
 0x25b   :  { %758 = vst [vmem:[#allocation3 + $0x78] sm:$0xf0] %v750_v61  ;;  %v717_v0 = vsel %vm1755_vm7, %v708_v62, %v710_v63 }
 0x25c   :  { %v719_v3 = vsel %vm1224_vm2, %v717_v0, 0.0  ;;  %vm1761_vm2 = vmand %vm1395_vm9, %vm1230_vm3 }
 0x25d   :  { %723 = vst [vmem:[#allocation3 + $0x60] sm:$0xf] %v719_v3  ;;  %v712_v4 = vpop.permute.xlu0 %711  ;;  %vm1764_vm3 = vmand %vm1399_vm11, %vm1321_vm13  ;;  %vm1771_vm13 = vcmask 302080  }
 0x25e   :  { %v716_v13 = vsel %vm1756_vm12, %v710_v63, %v712_v4  ;;  %v714_v14 = vpop.permute.xlu1 %713  ;;  %vm1773_vm5 = vmmov %vm1771_vm13 }
 0x25f   :  { %v720_v12 = vsel %vm1758_vm0, %v716_v13, 0.0  ;;  %v715_v6 = vsel %vm1759_vm4, %v712_v4, %v714_v14  ;;  %v718_v17 = vsel %vm1760_vm1, %v714_v14, %v708_v62 }
 0x260   :  { %724 = vst [vmem:[#allocation3 + $0x68] sm:$0xf] %v720_v12  ;;  %v721_v15 = vsel %vm1255_vm6, %v715_v6, 0.0  ;;  %v722_v42 = vsel %vm1761_vm2, %v718_v17, 0.0  ;;  %vm1763_vm6 = vmmov %vm1762_vm8 }
 0x261   :  { %725 = vst [vmem:[#allocation3 + $0x70] sm:$0xf] %v721_v15  ;;  %726 = vst [vmem:[#allocation3 + $0x78] sm:$0xf] %v722_v42  ;;  %v760_v29 = vpop.permute.xlu0 %759 }
 0x262   :  { %v762_v18 = vpop.permute.xlu1 %761  ;;  %vm1765_vm7 = vmmov %vm1763_vm6 }
 0x263   :  { %v769_v19 = vsel %vm1762_vm8, %v760_v29, %v762_v18  ;;  %vm1766_vm12 = vmmov %vm1763_vm6 }
 0x264   :  { %v771_v20 = vsel %vm1327_vm14, %v769_v19, 0.0  ;;  %v795_v16 = vld [vmem:[#allocation3 + $0x60] sm:$0xff]  ;;  %vm1767_vm14 = vmand %vm1395_vm9, %vm1347_vm10  ;;  %vm1768_vm9 = vcmask 1044480  }
 0x265   :  { %775 = vst [vmem:[#allocation3 + $0x80] sm:$0xf] %v771_v20  ;;  %v764_v10 = vpop.permute.xlu0 %763  ;;  %v1020_v7 = vpack.c.bf16 %v795_v16, %v791_v22  ;;  %vm1769_vm10 = vmmov %vm1768_vm9 }
 0x266   :  { %v768_v30 = vsel %vm1763_vm6, %v762_v18, %v764_v10  ;;  %v766_v21 = vpop.permute.xlu1 %765  ;;  %vm1770_vm11 = vmmov %vm1768_vm9 }
 0x267   :  { %v772_v41 = vsel %vm1764_vm3, %v768_v30, 0.0  ;;  %v767_v23 = vsel %vm1765_vm7, %v764_v10, %v766_v21  ;;  %v770_v2 = vsel %vm1766_vm12, %v766_v21, %v760_v29  ;;  %v796_v25 = vld [vmem:[#allocation3 + $0x68] sm:$0xff] }
 0x268   :  { %776 = vst [vmem:[#allocation3 + $0x88] sm:$0xf] %v772_v41  ;;  %v773_v27 = vsel %vm1333_vm15, %v767_v23, 0.0  ;;  %v774_v1 = vsel %vm1767_vm14, %v770_v2, 0.0  ;;  %v1018_v60 = vpack.c.bf16 %v796_v25, %v792_v24  ;;  %v798_v28 = vld [vmem:[#allocation3 + $0x78] sm:$0xff]  ;;  %v797_v32 = vld [vmem:[#allocation3 + $0x70] sm:$0xff]  ;;  %vm1772_vm15 = vmmov %vm1768_vm9 }
 0x269   :  { %777 = vst [vmem:[#allocation3 + $0x90] sm:$0xf] %v773_v27  ;;  %778 = vst [vmem:[#allocation3 + $0x98] sm:$0xf] %v774_v1  ;;  %v1026_v33 = vpack.c.bf16 %v798_v28, %v794_v26  ;;  %v1028_v34 = vpack.c.bf16 %v797_v32, %v793_v31 }
 0x26a   :  { %1019 = vmatprep.subr.bf16.mxu0 %v1018_v60 }
 0x26b   :  { %1021 = vmatpush1.bf16.msra.mxu0 %v1020_v7  ;;  %1027 = vmatprep.subr.bf16.mxu1 %v1026_v33 }
 0x26c   :  { %1029 = vmatpush1.bf16.msra.mxu1 %v1028_v34  ;;  %v799_v59 = vld [vmem:[#allocation3 + $0x80] sm:$0x1f] }
 0x26f   :  { %v800_v5 = vld [vmem:[#allocation3 + $0x88] sm:$0x1f] }
 0x270   :  { %992 = vmatprep.subr.msk.mxu0 %vm1768_vm9, %v800_v5  ;;  %v802_v35 = vld [vmem:[#allocation3 + $0x98] sm:$0x1f]  ;;  %v801_v36 = vld [vmem:[#allocation3 + $0x90] sm:$0x1f] }
 0x271   :  { %993 = vmatpush1.msk.msra.mxu0 %vm1769_vm10, %v799_v59  ;;  %995 = vmatprep.subr.msk.mxu1 %vm1770_vm11, %v802_v35 }
 0x272   :  { %994 = vmatmul.mubr.msk.f32.vlgmr.msra.gmra.mrb[2].mxu0 %vm1771_vm13, %v782_v9  ;;  %996 = vmatpush1.msk.msra.mxu1 %vm1772_vm15, %v801_v36 }
 0x273   :  { %997 = vmatmul.mubr.msk.f32.vlgmr.msra.gmra.mrb[2].mxu1 %vm1773_vm5, %v782_v9 }
 0x345   :  { %v884_v37 = vpop.f32.mrb[2].mxu0 }
 0x346   :  { %v886_v38 = vpop.f32.mrb[3].mxu0  ;;  %v955_v39 = vpop.f32.mrb[2].mxu1 }
 0x347   :  { %v964_v40 = vcombine.low %v884_v37, %v886_v38  ;;  %v957_v43 = vpop.f32.mrb[3].mxu1 }
 0x348   :  { %v965_v8 = vcombine.low %v955_v39, %v957_v43 }
 0x349   :  { %968 = vst [vmem:[#allocation9] sm:$0xff] %v964_v40 }
 0x34a   :  { %969 = vst [vmem:[#allocation9 + $0x8] sm:$0xff] %v965_v8 }
 0x34b   :  { %1100 = shalt.err (!%p1097_p6)
}
 0x34c   :  { %s1101_s21 = scalar_lea.hbm %s1683_s3, 256 }
 0x34d   :  { %p1102_p7 = scmp.ne.s32.totalorder %s1683_s3, %s1101_s21  ;;  %p1105_p8 = scmp.lt.u32.totalorder %s1101_s21, %s1683_s3 }
 0x34f   :  { %p1107_p9 = pnand %p1105_p8, %p1102_p7 }
 0x351   :  { %1110 = shalt.err (!%p1107_p9)
}
 0x352   :  { %979 = dma.vmem_to_hbm [thread:$0]  %s977_s18, 256, %s1683_s3, [#allocation6]  }
 0x353   :  { %1115 = dma.done.wait [#allocation6], 256  }
 0x354   :  { %1116 = vsyncadd [#allocation6], 4294967040 }
 0x355   :  { %983 = vsyncpa [#allocation5], 1 }
 0x356   :  { %984 = vsyncpa [#allocation8], 1 }
 0x357   :  { %985 = vsyncpa [#allocation6], 1 }

</bundles_post_ra>
